<compile_context>
chip_gen: v6e
topology: v6e:2x2x1
jax: 0.10.0
libtpu: 0.0.40
codegen_flags: <defaults>
</compile_context>

<pallas_src>
import functools
import math

import jax
import jax.numpy as jnp
from jax.experimental import pallas as pl
from jax.experimental.pallas import tpu as pltpu


def _round_up(x, m):
    return ((x + m - 1) // m) * m


# ---------------------------------------------------------------------------
# Activation dispatch (static, resolved at trace time inside the kernel body)
# ---------------------------------------------------------------------------
def _apply_activation(y, name):
    if name == "relu":
        return jnp.maximum(y, 0.0)
    if name == "tanh":
        return jnp.tanh(y)
    if name == "sigmoid":
        return jax.nn.sigmoid(y)
    if name == "softmax":
        # NOTE: matches nn.LogSoftmax() (log-softmax over the feature dim).
        m = jnp.max(y, axis=-1, keepdims=True)
        z = y - m
        return z - jnp.log(jnp.sum(jnp.exp(z), axis=-1, keepdims=True))
    if name == "selu":
        alpha = 1.6732632423543772
        scale = 1.0507009873554805
        neg = alpha * (jnp.exp(jnp.minimum(y, 0.0)) - 1.0)
        return scale * jnp.where(y > 0, y, neg)
    if name == "elu":
        return jnp.where(y > 0, y, jnp.exp(jnp.minimum(y, 0.0)) - 1.0)
    if name == "leakyrelu":
        return jnp.where(y > 0, y, 0.01 * y)
    if name == "none":
        return y
    raise ValueError(f"unknown activation {name!r}")


# ---------------------------------------------------------------------------
# Fully fused MLP Pallas kernel: all layers in one kernel body
# ---------------------------------------------------------------------------
def _fused_mlp_kernel(x_ref, *refs, activations):
    # refs = (w0, b0, w1, b1, ..., wL-1, bL-1, o_ref)
    o_ref = refs[-1]
    param_refs = refs[:-1]
    y = x_ref[...]
    for i, act in enumerate(activations):
        w = param_refs[2 * i][...]
        b = param_refs[2 * i + 1][...]
        y = jnp.dot(y, w, preferred_element_type=jnp.float32) + b
        y = _apply_activation(y, act)
    o_ref[...] = y.astype(o_ref.dtype)


def fused_mlp_forward(x, params, activations, *, batch_tile=128):
    """x: [B, Din] f32; params: [(W [Din,Dout], b [1,Dout]), ...] -> [B, out]."""
    B, Din = x.shape
    out_dim = params[-1][0].shape[1]

    # ---- lane-pad the final layer to a multiple of 128 (unmasked stores) ----
    # Safe only when the final activation is the identity (true for this MLP:
    # the last Linear has no activation).
    padded_params = list(params)
    out_dim_padded = out_dim
    if activations[-1] == "none":
        out_dim_padded = _round_up(out_dim, 128)
        if out_dim_padded != out_dim:
            w_last, b_last = params[-1]
            pad = out_dim_padded - out_dim
            w_last = jnp.pad(w_last, ((0, 0), (0, pad)))
            b_last = jnp.pad(b_last, ((0, 0), (0, pad)))
            padded_params[-1] = (w_last, b_last)

    # ---- batch tiling: multiple of 8 sublanes, parallel grid axis ----------
    tb = min(batch_tile, _round_up(B, 8))
    b_padded = _round_up(B, tb)
    if b_padded != B:
        x = jnp.pad(x, ((0, b_padded - B), (0, 0)))
    grid = (b_padded // tb,)

    in_specs = [pl.BlockSpec((tb, Din), lambda i: (i, 0))]
    flat_params = []
    for w, b in padded_params:
        in_specs.append(pl.BlockSpec(w.shape, lambda i: (0, 0)))
        in_specs.append(pl.BlockSpec(b.shape, lambda i: (0, 0)))
        flat_params.append(w)
        flat_params.append(b)

    kernel = functools.partial(_fused_mlp_kernel, activations=tuple(activations))
    out = pl.pallas_call(
        kernel,
        out_shape=jax.ShapeDtypeStruct((b_padded, out_dim_padded), jnp.float32),
        grid=grid,
        in_specs=in_specs,
        out_specs=pl.BlockSpec((tb, out_dim_padded), lambda i: (i, 0)),
        compiler_params=pltpu.CompilerParams(
            dimension_semantics=("parallel",)),
    )(x, *flat_params)

    return out[:B, :out_dim]


# ---------------------------------------------------------------------------
# MLP module (parameters built deterministically in-script)
# ---------------------------------------------------------------------------
class MLP:
    def __init__(self, input_dim, output_dim, hidden_sizes, activations, key):
        dims = [input_dim] + list(hidden_sizes) + [output_dim]
        # activation after each hidden Linear; final Linear has no activation
        self.activations = list(activations) + ["none"]
        assert len(self.activations) == len(dims) - 1

        self.params = []
        for i in range(len(dims) - 1):
            fan_in, fan_out = dims[i], dims[i + 1]
            key, kw, kb = jax.random.split(key, 3)
            bound = 1.0 / math.sqrt(fan_in)  # matches PyTorch Linear default init
            w = jax.random.uniform(kw, (fan_in, fan_out), jnp.float32, -bound, bound)
            b = jax.random.uniform(kb, (1, fan_out), jnp.float32, -bound, bound)
            self.params.append((w, b))

    def __call__(self, x):
        # One fused Pallas kernel for the whole network.
        return fused_mlp_forward(x, self.params, self.activations)

    def reference(self, x):
        # pure-JAX reference for verification
        for (w, b), act in zip(self.params, self.activations):
            x = _apply_activation(x @ w + b, act)
        return x


# ---------------------------------------------------------------------------
if __name__ == "__main__":
    key = jax.random.PRNGKey(0)
    key, kx, kp = jax.random.split(key, 3)

    batch = 8
    input_dim = 32
    hidden_sizes = [64, 64]
    activations = ["elu", "tanh"]
    output_dim = 4

    mlp = MLP(input_dim, output_dim, hidden_sizes, activations, kp)

    x = jax.random.normal(kx, (batch, input_dim), jnp.float32)

    out = mlp(x)
    out = jax.block_until_ready(out)

    ref = mlp.reference(x)
    assert out.shape == (batch, output_dim)
    assert jnp.allclose(out, ref, atol=2e-5, rtol=1e-5)

    print("KERNEL_OK")
</pallas_src>

<mosaic_0001>
module attributes {stable_mosaic.version = 11 : i64} {
  func.func @_fused_mlp_kernel(%arg0: i32, %arg1: memref<8x32xf32, #tpu.memory_space<vmem>>, %arg2: memref<32x64xf32, #tpu.memory_space<vmem>>, %arg3: memref<1x64xf32, #tpu.memory_space<vmem>>, %arg4: memref<64x64xf32, #tpu.memory_space<vmem>>, %arg5: memref<1x64xf32, #tpu.memory_space<vmem>>, %arg6: memref<64x128xf32, #tpu.memory_space<vmem>>, %arg7: memref<1x128xf32, #tpu.memory_space<vmem>>, %arg8: memref<8x128xf32, #tpu.memory_space<vmem>>) attributes {dimension_semantics = [#tpu.dimension_semantics<parallel>], iteration_bounds = array<i64: 1>, scalar_prefetch = 0 : i64, scratch_operands = 0 : i64, tpu.core_type = #tpu.core_type<tc>, window_params = [{transform_indices = @transform_0, window_bounds = array<i64: 8, 32>}, {pipeline_mode = #tpu.pipeline_mode<synchronous>, transform_indices = @transform_1, window_bounds = array<i64: 32, 64>}, {pipeline_mode = #tpu.pipeline_mode<synchronous>, transform_indices = @transform_2, window_bounds = array<i64: 1, 64>}, {pipeline_mode = #tpu.pipeline_mode<synchronous>, transform_indices = @transform_3, window_bounds = array<i64: 64, 64>}, {pipeline_mode = #tpu.pipeline_mode<synchronous>, transform_indices = @transform_4, window_bounds = array<i64: 1, 64>}, {pipeline_mode = #tpu.pipeline_mode<synchronous>, transform_indices = @transform_5, window_bounds = array<i64: 64, 128>}, {pipeline_mode = #tpu.pipeline_mode<synchronous>, transform_indices = @transform_6, window_bounds = array<i64: 1, 128>}, {transform_indices = @transform_7, window_bounds = array<i64: 8, 128>}]} {
    %c0 = arith.constant 0 : index
    %c0_0 = arith.constant 0 : index
    %0 = vector.load %arg1[%c0, %c0_0] : memref<8x32xf32, #tpu.memory_space<vmem>>, vector<8x32xf32>
    %c0_1 = arith.constant 0 : index
    %c0_2 = arith.constant 0 : index
    %1 = vector.load %arg2[%c0_1, %c0_2] : memref<32x64xf32, #tpu.memory_space<vmem>>, vector<32x64xf32>
    %c0_3 = arith.constant 0 : index
    %c0_4 = arith.constant 0 : index
    %2 = vector.load %arg3[%c0_3, %c0_4] : memref<1x64xf32, #tpu.memory_space<vmem>>, vector<1x64xf32>
    %cst = arith.constant dense<0.000000e+00> : vector<8x64xf32>
    %3 = tpu.matmul %0, %1, %cst {dimension_numbers = #tpu.dot_dimension_numbers<[1], [0], [0], [1], [0, 0, 1, 1], [], []>} : vector<8x32xf32>, vector<32x64xf32>, vector<8x64xf32> -> vector<8x64xf32>
    %4 = vector.broadcast %2 : vector<1x64xf32> to vector<8x64xf32>
    %5 = arith.addf %3, %4 : vector<8x64xf32>
    %cst_5 = arith.constant 0.000000e+00 : f32
    %6 = vector.broadcast %cst_5 : f32 to vector<8x64xf32>
    %7 = arith.cmpf ogt, %5, %6 : vector<8x64xf32>
    %cst_6 = arith.constant 0.000000e+00 : f32
    %8 = vector.broadcast %cst_6 : f32 to vector<8x64xf32>
    %9 = arith.minimumf %5, %8 : vector<8x64xf32>
    %10 = math.exp %9 : vector<8x64xf32>
    %cst_7 = arith.constant 1.000000e+00 : f32
    %11 = vector.broadcast %cst_7 : f32 to vector<8x64xf32>
    %12 = arith.subf %10, %11 : vector<8x64xf32>
    %13 = arith.select %7, %5, %12 : vector<8x64xi1>, vector<8x64xf32>
    %c0_8 = arith.constant 0 : index
    %c0_9 = arith.constant 0 : index
    %14 = vector.load %arg4[%c0_8, %c0_9] : memref<64x64xf32, #tpu.memory_space<vmem>>, vector<64x64xf32>
    %c0_10 = arith.constant 0 : index
    %c0_11 = arith.constant 0 : index
    %15 = vector.load %arg5[%c0_10, %c0_11] : memref<1x64xf32, #tpu.memory_space<vmem>>, vector<1x64xf32>
    %cst_12 = arith.constant dense<0.000000e+00> : vector<8x64xf32>
    %16 = tpu.matmul %13, %14, %cst_12 {dimension_numbers = #tpu.dot_dimension_numbers<[1], [0], [0], [1], [0, 0, 1, 1], [], []>} : vector<8x64xf32>, vector<64x64xf32>, vector<8x64xf32> -> vector<8x64xf32>
    %17 = vector.broadcast %15 : vector<1x64xf32> to vector<8x64xf32>
    %18 = arith.addf %16, %17 : vector<8x64xf32>
    %19 = math.tanh %18 : vector<8x64xf32>
    %c0_13 = arith.constant 0 : index
    %c0_14 = arith.constant 0 : index
    %20 = vector.load %arg6[%c0_13, %c0_14] : memref<64x128xf32, #tpu.memory_space<vmem>>, vector<64x128xf32>
    %c0_15 = arith.constant 0 : index
    %c0_16 = arith.constant 0 : index
    %21 = vector.load %arg7[%c0_15, %c0_16] : memref<1x128xf32, #tpu.memory_space<vmem>>, vector<1x128xf32>
    %cst_17 = arith.constant dense<0.000000e+00> : vector<8x128xf32>
    %22 = tpu.matmul %19, %20, %cst_17 {dimension_numbers = #tpu.dot_dimension_numbers<[1], [0], [0], [1], [0, 0, 1, 1], [], []>} : vector<8x64xf32>, vector<64x128xf32>, vector<8x128xf32> -> vector<8x128xf32>
    %23 = vector.broadcast %21 : vector<1x128xf32> to vector<8x128xf32>
    %24 = arith.addf %22, %23 : vector<8x128xf32>
    %c0_18 = arith.constant 0 : index
    %c0_19 = arith.constant 0 : index
    %25 = vector.load %arg8[%c0_18, %c0_19] : memref<8x128xf32, #tpu.memory_space<vmem>>, vector<8x128xf32>
    tpu.vector_store %arg8[%c0_18, %c0_19], %24 {strides = array<i32>} : memref<8x128xf32, #tpu.memory_space<vmem>>, vector<8x128xf32>,
    return
  }
  func.func @transform_0(%arg0: i32) -> (i32, i32) {
    %c0_i32 = arith.constant 0 : i32
    %c0_i32_0 = arith.constant 0 : i32
    return %arg0, %c0_i32 : i32, i32
  }
  func.func @transform_1(%arg0: i32) -> (i32, i32) {
    %c0_i32 = arith.constant 0 : i32
    %c0_i32_0 = arith.constant 0 : i32
    %c0_i32_1 = arith.constant 0 : i32
    return %c0_i32, %c0_i32_0 : i32, i32
  }
  func.func @transform_2(%arg0: i32) -> (i32, i32) {
    %c0_i32 = arith.constant 0 : i32
    %c0_i32_0 = arith.constant 0 : i32
    %c0_i32_1 = arith.constant 0 : i32
    return %c0_i32, %c0_i32_0 : i32, i32
  }
  func.func @transform_3(%arg0: i32) -> (i32, i32) {
    %c0_i32 = arith.constant 0 : i32
    %c0_i32_0 = arith.constant 0 : i32
    %c0_i32_1 = arith.constant 0 : i32
    return %c0_i32, %c0_i32_0 : i32, i32
  }
  func.func @transform_4(%arg0: i32) -> (i32, i32) {
    %c0_i32 = arith.constant 0 : i32
    %c0_i32_0 = arith.constant 0 : i32
    %c0_i32_1 = arith.constant 0 : i32
    return %c0_i32, %c0_i32_0 : i32, i32
  }
  func.func @transform_5(%arg0: i32) -> (i32, i32) {
    %c0_i32 = arith.constant 0 : i32
    %c0_i32_0 = arith.constant 0 : i32
    %c0_i32_1 = arith.constant 0 : i32
    return %c0_i32, %c0_i32_0 : i32, i32
  }
  func.func @transform_6(%arg0: i32) -> (i32, i32) {
    %c0_i32 = arith.constant 0 : i32
    %c0_i32_0 = arith.constant 0 : i32
    %c0_i32_1 = arith.constant 0 : i32
    return %c0_i32, %c0_i32_0 : i32, i32
  }
  func.func @transform_7(%arg0: i32) -> (i32, i32) {
    %c0_i32 = arith.constant 0 : i32
    %c0_i32_0 = arith.constant 0 : i32
    return %arg0, %c0_i32 : i32, i32
  }
}

</mosaic_0001>

<bundles_post_ra>
// kernel: tpu_custom_call.1
= control target key start
LH: loop header
LB: loop body
LE: loop exit
PB: predicated region body
PF: predicated region fallthrough
CT: control target
= control target key end

     0   :  { %12 = vsyncpa [#allocation3], 0  ;;  %s678_s0 = inlined_call_operand.hbm [shape: f32[8,32], index: 0, kind: input, shape index: {}]   ;;  %s679_s1 = inlined_call_operand.hbm [shape: f32[32,64], index: 1, kind: input, shape index: {}]   ;;  %s680_s2 = inlined_call_operand.vmem [shape: f32[1,64], index: 2, kind: input, shape index: {}]   ;;  %s681_s3 = inlined_call_operand.hbm [shape: f32[64,64], index: 3, kind: input, shape index: {}]   ;;  %s682_s4 = inlined_call_operand.vmem [shape: f32[1,64], index: 4, kind: input, shape index: {}]   ;;  %s683_s5 = inlined_call_operand.hbm [shape: f32[64,128], index: 5, kind: input, shape index: {}]   ;;  %s684_s6 = inlined_call_operand.vmem [shape: f32[1,128], index: 6, kind: input, shape index: {}]   ;;  %s685_s7 = inlined_call_operand.hbm [shape: f32[8,128], index: 7, kind: output, shape index: {}]  }
   0x1   :  { %13 = vsyncpa [#allocation6], 0 }
   0x2   :  { %14 = vsyncpa [#allocation9], 0 }
   0x3   :  { %15 = vsyncpa [#allocation4], 0  ;;  %s568_s24 = smov [#allocation5]  }
   0x4   :  { %s31_s25 = sshll.u32 %s568_s24, 4  ;;  %s32_s25 = int_to_ptr.vmem [resolvable:$true] %s31_s25 }
   0x5   :  { %s468_s26 = scalar_lea.vmem %s32_s25, 512  ;;  %p473_p1 = scmp.lt.s32.totalorder %s32_s25, %s32_s25 }
   0x6   :  { %p469_p0 = scmp.ne.s32.totalorder %s32_s25, %s468_s26  ;;  %p474_p2 = scmp.lt.s32.totalorder %s468_s26, %s468_s26 }
   0x8   :  { %p475_p3 = por %p474_p2, %p473_p1 }
   0xa   :  { %p476_p4 = pnand %p475_p3, %p469_p0 }
   0xc   :  { %479 = shalt.err (!%p476_p4)
}
   0xd   :  { %s569_s27 = smov 128   ;;  %s570_s28 = smov 8  }
   0xe   :  { %37 = dma.hbm_to_vmem [thread:$0]  %s679_s1, 512, %s32_s25, [#allocation6], %s569_s27, %s569_s27, %s570_s28  }
   0xf   :  { %s571_s8 = smov [#allocation2]   ;;  %s572_s10 = smov [#allocation7]  }
  0x10   :  { %s22_s9 = sshll.u32 %s571_s8, 4  ;;  %s45_s11 = sshll.u32 %s572_s10, 4  ;;  %s23_s9 = int_to_ptr.vmem [resolvable:$true] %s22_s9  ;;  %s46_s11 = int_to_ptr.vmem [resolvable:$true] %s45_s11 }
  0x11   :  { %s488_s12 = scalar_lea.vmem %s23_s9, 128  ;;  %p493_p6 = scmp.lt.s32.totalorder %s23_s9, %s23_s9 }
  0x12   :  { %p489_p5 = scmp.ne.s32.totalorder %s23_s9, %s488_s12  ;;  %p494_p7 = scmp.lt.s32.totalorder %s488_s12, %s488_s12 }
  0x14   :  { %p495_p8 = por %p494_p7, %p493_p6 }
  0x16   :  { %p496_p9 = pnand %p495_p8, %p489_p5 }
  0x18   :  { %499 = shalt.err (!%p496_p9)
}
  0x19   :  { %25 = dma.hbm_to_vmem [thread:$0]  %s678_s0, 128, %s23_s9, [#allocation3]  }
  0x1a   :  { %s508_s15 = scalar_lea.vmem %s46_s11, 1024  ;;  %p513_p11 = scmp.lt.s32.totalorder %s46_s11, %s46_s11 }
  0x1b   :  { %p509_p10 = scmp.ne.s32.totalorder %s46_s11, %s508_s15  ;;  %p514_p12 = scmp.lt.s32.totalorder %s508_s15, %s508_s15 }
  0x1d   :  { %p515_p13 = por %p514_p12, %p513_p11 }
  0x1f   :  { %p516_p0 = pnand %p515_p13, %p509_p10 }
  0x21   :  { %519 = shalt.err (!%p516_p0)
}
  0x22   :  { %51 = dma.hbm_to_vmem [thread:$0]  %s681_s3, 1024, %s46_s11, [#allocation6], %s569_s27, %s569_s27, %s570_s28  }
  0x23   :  { %s573_s17 = smov [#allocation8]  }
  0x24   :  { %s59_s18 = sshll.u32 %s573_s17, 4  ;;  %s60_s18 = int_to_ptr.vmem [resolvable:$true] %s59_s18 }
  0x25   :  { %s528_s19 = scalar_lea.vmem %s60_s18, 1024  ;;  %p533_p2 = scmp.lt.s32.totalorder %s60_s18, %s60_s18 }
  0x26   :  { %p529_p1 = scmp.ne.s32.totalorder %s60_s18, %s528_s19  ;;  %p534_p3 = scmp.lt.s32.totalorder %s528_s19, %s528_s19 }
  0x28   :  { %p535_p4 = por %p534_p3, %p533_p2 }
  0x2a   :  { %p536_p5 = pnand %p535_p4, %p529_p1 }
  0x2c   :  { %539 = shalt.err (!%p536_p5)
}
  0x2d   :  { %65 = dma.hbm_to_vmem [thread:$0]  %s683_s5, 1024, %s60_s18, [#allocation9], %s569_s27, %s569_s27, %s570_s28  }
  0x2e   :  { %560 = dma.done.wait [#allocation3], 128  }
  0x2f   :  { %561 = vsyncadd [#allocation3], 4294967168 }
  0x30   :  { %562 = dma.done.wait [#allocation6], 1536  }
  0x31   :  { %563 = vsyncadd [#allocation6], 4294965760 }
  0x32   :  { %564 = dma.done.wait [#allocation9], 1024  }
  0x33   :  { %565 = vsyncadd [#allocation9], 4294966272  ;;  %v574_v0 = vmov 0.0   ;;  %vm575_vm0 = vmmov 0   ;;  %v84_v1 = vld [vmem:[#allocation5 + $0x18] sm:$0xff]  ;;  %v83_v2 = vld [vmem:[#allocation5 + $0x10] sm:$0xff] }
  0x34   :  { %398 = vmatprep.subr.mxu0 %v574_v0  ;;  %406 = vmatprep.mubr.msk.f32.mxu0 %vm575_vm0, %v574_v0  ;;  %v82_v3 = vld [vmem:[#allocation5 + $0x8] sm:$0xff]  ;;  %v81_v4 = vld [vmem:[#allocation5] sm:$0xff]  ;;  %v80_v5 = vld [vmem:[#allocation2] sm:$0xff]  ;;  %vm92_vm1 = vcmask 261120   ;;  %vm187_vm2 = vcmask 523264   ;;  %s576_s24 = smov [#allocation10]  }
  0x35   :  { %409 = vmatprep.subr.mxu1 %v574_v0  ;;  %425 = vmatprep.mubr.msk.f32.mxu1 %vm575_vm0, %v574_v0  ;;  %v179_v6 = vld [vmem:[#allocation7 + $0x38] sm:$0xff]  ;;  %v178_v7 = vld [vmem:[#allocation7 + $0x30] sm:$0xff]  ;;  %v177_v8 = vld [vmem:[#allocation7 + $0x28] sm:$0xff]  ;;  %s357_s25 = sshll.u32 %s576_s24, 4  ;;  %s358_s25 = int_to_ptr.vmem [resolvable:$true] %s357_s25 }
  0x36   :  { %399 = vmatpush3.msra.mxu0 %v84_v1  ;;  %410 = vmatpush3.msra.mxu1 %v179_v6  ;;  %v176_v9 = vld [vmem:[#allocation7 + $0x20] sm:$0xff]  ;;  %v175_v10 = vld [vmem:[#allocation7 + $0x18] sm:$0xff]  ;;  %v174_v11 = vld [vmem:[#allocation7 + $0x10] sm:$0xff]  ;;  %s540_s26 = scalar_lea.vmem %s358_s25, 128  ;;  %p545_p7 = scmp.lt.s32.totalorder %s358_s25, %s358_s25 }
  0x37   :  { %400 = vmatprep.subr.mxu0 %v574_v0  ;;  %411 = vmatprep.subr.mxu1 %v574_v0  ;;  %v173_v12 = vld [vmem:[#allocation7 + $0x8] sm:$0xff]  ;;  %v172_v13 = vld [vmem:[#allocation7] sm:$0xff]  ;;  %v368_v14 = vld [vmem:[%s680_s2] ss:$0 sm:$0xff]  ;;  %p541_p6 = scmp.ne.s32.totalorder %s358_s25, %s540_s26  ;;  %p546_p8 = scmp.lt.s32.totalorder %s540_s26, %s540_s26 }
  0x38   :  { %401 = vmatpush3.msra.mxu0 %v83_v2  ;;  %412 = vmatpush3.msra.mxu1 %v178_v7  ;;  %v269_v23 = vld [vmem:[#allocation8 + $0x38] sm:$0xff]  ;;  %v268_v24 = vld [vmem:[#allocation8 + $0x30] sm:$0xff]  ;;  %v267_v25 = vld [vmem:[#allocation8 + $0x28] sm:$0xff] }
  0x39   :  { %402 = vmatprep.subr.mxu0 %v574_v0  ;;  %413 = vmatprep.subr.mxu1 %v574_v0  ;;  %v266_v26 = vld [vmem:[#allocation8 + $0x20] sm:$0xff]  ;;  %v265_v27 = vld [vmem:[#allocation8 + $0x18] sm:$0xff]  ;;  %v264_v28 = vld [vmem:[#allocation8 + $0x10] sm:$0xff]  ;;  %p547_p9 = por %p546_p8, %p545_p7 }
  0x3a   :  { %403 = vmatpush3.msra.mxu0 %v82_v3  ;;  %414 = vmatpush3.msra.mxu1 %v177_v8  ;;  %v263_v29 = vld [vmem:[#allocation8 + $0x8] sm:$0xff]  ;;  %v262_v30 = vld [vmem:[#allocation8] sm:$0xff]  ;;  %v371_v31 = vld [vmem:[%s682_s4] ss:$0 sm:$0xff] }
  0x3b   :  { %404 = vmatprep.subr.mxu0 %v574_v0  ;;  %415 = vmatprep.subr.mxu1 %v574_v0  ;;  %v373_v36 = vld [vmem:[%s684_s6] ss:$0 sm:$0xff]  ;;  %p548_p10 = pnand %p547_p9, %p541_p6 }
  0x3c   :  { %405 = vmatpush3.msra.mxu0 %v81_v4  ;;  %416 = vmatpush3.msra.mxu1 %v176_v9 }
  0x3d   :  { %407 = vmatmul.mubr.msk.f32.vlgmr.msra.gmra.mxu0 %vm92_vm1, %v80_v5  ;;  %428 = vmatprep.subr.mxu0 %v574_v0 }
  0x3e   :  { %444 = vmatprep.mubr.msk.f32.mxu0 %vm575_vm0, %v574_v0  ;;  %417 = vmatprep.subr.mxu1 %v574_v0 }
  0x3f   :  { %418 = vmatpush3.msra.mxu1 %v175_v10  ;;  %429 = vmatpush3.msra.mxu0 %v269_v23 }
  0x40   :  { %419 = vmatprep.subr.mxu1 %v574_v0  ;;  %430 = vmatprep.subr.mxu0 %v574_v0 }
  0x41   :  { %420 = vmatpush3.msra.mxu1 %v174_v11  ;;  %431 = vmatpush3.msra.mxu0 %v268_v24 }
  0x42   :  { %421 = vmatprep.subr.mxu1 %v574_v0  ;;  %432 = vmatprep.subr.mxu0 %v574_v0 }
  0x43   :  { %422 = vmatpush3.msra.mxu1 %v173_v12  ;;  %433 = vmatpush3.msra.mxu0 %v267_v25 }
  0x44   :  { %423 = vmatprep.subr.mxu1 %v574_v0  ;;  %434 = vmatprep.subr.mxu0 %v574_v0 }
  0x45   :  { %424 = vmatpush3.msra.mxu1 %v172_v13  ;;  %435 = vmatpush3.msra.mxu0 %v266_v26 }
  0x46   :  { %436 = vmatprep.subr.mxu0 %v574_v0 }
  0x47   :  { %437 = vmatpush3.msra.mxu0 %v265_v27 }
  0x48   :  { %438 = vmatprep.subr.mxu0 %v574_v0 }
  0x49   :  { %439 = vmatpush3.msra.mxu0 %v264_v28 }
  0x4a   :  { %440 = vmatprep.subr.mxu0 %v574_v0 }
  0x4b   :  { %441 = vmatpush3.msra.mxu0 %v263_v29 }
  0x4c   :  { %442 = vmatprep.subr.mxu0 %v574_v0 }
  0x4d   :  { %443 = vmatpush3.msra.mxu0 %v262_v30 }
  0xfd   :  { %v162_v15 = vpop.f32.mrf.mxu0 }
  0xfe   :  { %v163_v16 = vadd.f32 %v368_v14, %v162_v15 }
  0xff   :  { %v408_v17 = vpop.f32.mrf.mxu0 }
 0x100   :  { %v167_v18 = vmin.f32 %v163_v16, 0.0  ;;  %vm166_vm3 = vcmp.gt.f32.partialorder %v163_v16, 0.0 }
 0x102   :  { %v168_v19 = vmul.f32 1.442695, %v167_v18 }
 0x104   :  { %456 = vpow2.f32 %v168_v19 }
 0x111   :  { %v457_v20 = vpop.eup %456 }
 0x112   :  { %v370_v21 = vadd.f32 -1.0, %v457_v20 }
 0x114   :  { %v171_v22 = vsel %vm166_vm3, %v163_v16, %v370_v21 }
 0x115   :  { %426 = vmatmul.mubr.msk.f32.vlgmr.msra.gmra.mxu1 %vm187_vm2, %v171_v22 }
 0x1d5   :  { %v257_v32 = vpop.f32.mrf.mxu1 }
 0x1d6   :  { %v258_v33 = vadd.f32 %v371_v31, %v257_v32 }
 0x1d7   :  { %v427_v34 = vpop.f32.mrf.mxu1 }
 0x1d8   :  { %458 = vtanh.f32 %v258_v33 }
 0x1e5   :  { %v459_v35 = vpop.eup %458 }
 0x1e6   :  { %445 = vmatmul.mubr.msk.f32.vlgmr.msra.gmra.mxu0 %vm187_vm2, %v459_v35 }
 0x2a6   :  { %v346_v37 = vpop.f32.mrf.mxu0 }
 0x2a7   :  { %v347_v38 = vadd.f32 %v373_v36, %v346_v37 }
 0x2a8   :  { %v446_v39 = vpop.f32.mrf.mxu0 }
 0x2a9   :  { %350 = vst [vmem:[#allocation10] sm:$0xff] %v347_v38 }
 0x2aa   :  { %551 = shalt.err (!%p548_p10)
}
 0x2ab   :  { %360 = dma.vmem_to_hbm [thread:$0]  %s358_s25, 128, %s685_s7, [#allocation4]  }
 0x2ac   :  { %566 = dma.done.wait [#allocation4], 128  }
 0x2ad   :  { %567 = vsyncadd [#allocation4], 4294967168 }
 0x2ae   :  { %364 = vsyncpa [#allocation3], 1 }
 0x2af   :  { %365 = vsyncpa [#allocation6], 1 }
 0x2b0   :  { %366 = vsyncpa [#allocation9], 1 }
 0x2b1   :  { %367 = vsyncpa [#allocation4], 1 }

</bundles_post_ra>
